<compile_context>
chip_gen: v7x
topology: tpu7x:2x2x1
jax: 0.10.0
libtpu: 0.0.40
codegen_flags: <defaults>
</compile_context>

<pallas_src>
import jax
import jax.numpy as jnp
from jax import lax
from jax.experimental import pallas as pl
from jax.experimental.pallas import tpu as pltpu

MASS = 60.0


def _field_loss_kernel(pos_ref, nbr_ref, sq_ref, fn_ref):
    # pos_ref: [T, 4]      lanes    = (ox, oy, tx, ty), sublanes = frames
    # nbr_ref: [5, N_pad]  sublanes = (nx, ny, cos_a, sin_a, mass), lanes = nbrs
    # sq_ref : [T, 1]      per-frame squared prediction error (loss1 partial)
    # fn_ref : [T, 1]      per-frame field-energy norm        (loss2 partial)
    ox = pos_ref[:, 0:1]                      # [T, 1]
    oy = pos_ref[:, 1:2]
    tx = pos_ref[:, 2:3]
    ty = pos_ref[:, 3:4]

    # --- loss1 partial: per-frame squared error (summed over the 2 coords) ---
    dxt = ox - tx
    dyt = oy - ty
    sq_ref[...] = dxt * dxt + dyt * dyt

    # --- loss2 partial: social-field energy ---
    nx = nbr_ref[0:1, :]                      # [1, N_pad]
    ny = nbr_ref[1:2, :]
    cos_a = nbr_ref[2:3, :]
    sin_a = nbr_ref[3:4, :]
    m = nbr_ref[4:5, :]                       # MASS for real nbrs, 0 for padding

    dx = ox - nx                              # [T, N_pad] -- one full vreg each
    dy = oy - ny
    x_ = cos_a * dx + sin_a * dy              # rotate into neighbour frame
    y_ = cos_a * dy - sin_a * dx
    x2 = x_ * x_
    y2 = y_ * y_
    den = x2 * x2 * x2 + y2 * y2 * y2 + 6.0   # x_**6 + y_**6 + 6 via VALU muls
    e = m * pl.reciprocal(den, approx=True)   # padded lanes: m == 0 -> e == 0

    # Direction folded into a single weight w = e / |d|.  Sign dropped: the
    # final sqrt(ex^2 + ey^2) is sign-invariant vs the reference atan2 form.
    # r2 == 0 (ped exactly on a neighbour / padded lane at origin) -> w = 0.
    r2 = dx * dx + dy * dy
    w = jnp.where(r2 > 0.0, e * lax.rsqrt(r2), 0.0)
    ex = jnp.sum(w * dx, axis=-1, keepdims=True)   # [T, 1] lane reduce (XLU)
    ey = jnp.sum(w * dy, axis=-1, keepdims=True)
    fn_ref[...] = jnp.sqrt(ex * ex + ey * ey)


def field_loss(output, target, neighbours):
    """
    output, target: [pre_len, batch, 2]  (PyTorch axis convention)
    neighbours:     [batch, N, 5]        columns: [x, y, v_x, v_y, angle]
    Returns a scalar float32 loss.
    """
    T, B, _ = output.shape
    N = neighbours.shape[1]
    n_pad = max(128, pl.cdiv(N, 128) * 128)   # lane-dense last dim for hot loop

    # Positions packed per pedestrian as [T, 4] = (ox, oy, tx, ty) on lanes,
    # frames on sublanes -> the [T, N_pad] block never needs a relayout.
    out_f = jnp.transpose(output.astype(jnp.float32), (1, 0, 2))    # [B, T, 2]
    tgt_f = jnp.transpose(target.astype(jnp.float32), (1, 0, 2))    # [B, T, 2]
    pos_pack = jnp.concatenate([out_f, tgt_f], axis=-1)             # [B, T, 4]

    # Neighbours packed per pedestrian as [5, N_pad] planes; cos/sin precomputed
    # here (XLA) and a mass plane doubles as the padded-lane mask.
    nbr_f = neighbours.astype(jnp.float32)
    cos_a = jnp.cos(nbr_f[..., 4])
    sin_a = jnp.sin(nbr_f[..., 4])
    m = jnp.full((B, N), MASS, dtype=jnp.float32)
    planes = jnp.stack([nbr_f[..., 0], nbr_f[..., 1], cos_a, sin_a, m], axis=1)
    nbr_pack = jnp.pad(planes, ((0, 0), (0, 0), (0, n_pad - N)))     # [B,5,n_pad]

    sq, fn = pl.pallas_call(
        _field_loss_kernel,
        grid=(B,),
        out_shape=(jax.ShapeDtypeStruct((B, T, 1), jnp.float32),
                   jax.ShapeDtypeStruct((B, T, 1), jnp.float32)),
        in_specs=[
            pl.BlockSpec((None, T, 4), lambda i: (i, 0, 0)),
            pl.BlockSpec((None, 5, n_pad), lambda i: (i, 0, 0)),
        ],
        out_specs=(
            pl.BlockSpec((None, T, 1), lambda i: (i, 0, 0)),
            pl.BlockSpec((None, T, 1), lambda i: (i, 0, 0)),
        ),
        compiler_params=pltpu.CompilerParams(
            dimension_semantics=("parallel",)),   # v7x: shard peds over 2 TCs
    )(pos_pack, nbr_pack)

    # Trivial final means (32 elements) in XLA.
    mse = jnp.sum(sq) / float(T * B * 2)          # nn.MSELoss over [T, B, 2]
    field = jnp.sum(fn) / float(B * T)            # mean over peds of frame mean
    return mse + field


def _reference(output, target, neighbours):
    """Pure-JAX reference mirroring the PyTorch loops (vectorized)."""
    out_b = jnp.transpose(output, (1, 0, 2))
    tgt_b = jnp.transpose(target, (1, 0, 2))
    mse = jnp.mean((out_b - tgt_b) ** 2)

    px = out_b[..., 0][:, :, None]
    py = out_b[..., 1][:, :, None]
    nx = neighbours[..., 0][:, None, :]
    ny = neighbours[..., 1][:, None, :]
    ang = neighbours[..., 4][:, None, :]
    x_ = jnp.cos(ang) * (px - nx) + jnp.sin(ang) * (py - ny)
    y_ = -jnp.sin(ang) * (px - nx) + jnp.cos(ang) * (py - ny)
    e = MASS / (x_ ** 6 + y_ ** 6 + 6.0)
    theta = jnp.arctan2(ny - py, nx - px)
    ex = jnp.sum(e * jnp.cos(theta), axis=-1)
    ey = jnp.sum(e * jnp.sin(theta), axis=-1)
    field = jnp.mean(jnp.sqrt(ex ** 2 + ey ** 2))
    return mse + field


if __name__ == "__main__":
    key = jax.random.PRNGKey(0)
    k1, k2, k3, k4 = jax.random.split(key, 4)

    PRE_LEN, BATCH, N_NEIGH = 8, 2, 4   # pre_len, batch (=len(ped_id)), nbrs/ped

    output = jax.random.normal(k1, (PRE_LEN, BATCH, 2), dtype=jnp.float32) * 2.0
    target = output + 0.1 * jax.random.normal(k2, (PRE_LEN, BATCH, 2),
                                              dtype=jnp.float32)

    # Synthetic neighbour states [x, y, v_x, v_y, angle] near the trajectories.
    nbr_pos = jax.random.normal(k3, (BATCH, N_NEIGH, 2), dtype=jnp.float32) * 2.0
    nbr_vel = jax.random.normal(k4, (BATCH, N_NEIGH, 2), dtype=jnp.float32)
    nbr_ang = jnp.arctan2(nbr_vel[..., 1], nbr_vel[..., 0])[..., None]
    neighbours = jnp.concatenate([nbr_pos, nbr_vel, nbr_ang], axis=-1)  # [B,N,5]

    loss = jax.block_until_ready(field_loss(output, target, neighbours))
    ref = jax.block_until_ready(_reference(output, target, neighbours))
    # Tolerance covers the approximate EUP reciprocal (pl.reciprocal approx=True);
    # use approx=False if bit-level parity with the reference is required.
    assert jnp.allclose(loss, ref, rtol=2e-3, atol=1e-4), (loss, ref)
    print("KERNEL_OK")
</pallas_src>

<mosaic_0001>
module attributes {stable_mosaic.version = 11 : i64} {
  func.func @_field_loss_kernel(%arg0: i32, %arg1: memref<1x8x4xf32, #tpu.memory_space<vmem>>, %arg2: memref<1x5x128xf32, #tpu.memory_space<vmem>>, %arg3: memref<1x8x1xf32, #tpu.memory_space<vmem>>, %arg4: memref<1x8x1xf32, #tpu.memory_space<vmem>>) attributes {dimension_semantics = [#tpu.dimension_semantics<parallel>], iteration_bounds = array<i64: 2>, scalar_prefetch = 0 : i64, scratch_operands = 0 : i64, tpu.core_type = #tpu.core_type<tc>, window_params = [{transform_indices = @transform_0, window_bounds = array<i64: 1, 8, 4>}, {transform_indices = @transform_1, window_bounds = array<i64: 1, 5, 128>}, {transform_indices = @transform_2, window_bounds = array<i64: 1, 8, 1>}, {transform_indices = @transform_3, window_bounds = array<i64: 1, 8, 1>}]} {
    %c0 = arith.constant 0 : index
    %c0_0 = arith.constant 0 : index
    %c0_1 = arith.constant 0 : index
    %0 = vector.load %arg1[%c0, %c0_0, %c0_1] : memref<1x8x4xf32, #tpu.memory_space<vmem>>, vector<1x8x1xf32>
    %1 = vector.shape_cast %0 : vector<1x8x1xf32> to vector<8x1xf32>
    %c0_2 = arith.constant 0 : index
    %c0_3 = arith.constant 0 : index
    %c1 = arith.constant 1 : index
    %2 = vector.load %arg1[%c0_2, %c0_3, %c1] : memref<1x8x4xf32, #tpu.memory_space<vmem>>, vector<1x8x1xf32>
    %3 = vector.shape_cast %2 : vector<1x8x1xf32> to vector<8x1xf32>
    %c0_4 = arith.constant 0 : index
    %c0_5 = arith.constant 0 : index
    %c2 = arith.constant 2 : index
    %4 = vector.load %arg1[%c0_4, %c0_5, %c2] : memref<1x8x4xf32, #tpu.memory_space<vmem>>, vector<1x8x1xf32>
    %5 = vector.shape_cast %4 : vector<1x8x1xf32> to vector<8x1xf32>
    %c0_6 = arith.constant 0 : index
    %c0_7 = arith.constant 0 : index
    %c3 = arith.constant 3 : index
    %6 = vector.load %arg1[%c0_6, %c0_7, %c3] : memref<1x8x4xf32, #tpu.memory_space<vmem>>, vector<1x8x1xf32>
    %7 = vector.shape_cast %6 : vector<1x8x1xf32> to vector<8x1xf32>
    %8 = arith.subf %1, %5 : vector<8x1xf32>
    %9 = arith.subf %3, %7 : vector<8x1xf32>
    %10 = arith.mulf %8, %8 : vector<8x1xf32>
    %11 = arith.mulf %9, %9 : vector<8x1xf32>
    %12 = arith.addf %10, %11 : vector<8x1xf32>
    %c0_8 = arith.constant 0 : index
    %c0_9 = arith.constant 0 : index
    %c0_10 = arith.constant 0 : index
    %13 = vector.load %arg3[%c0_8, %c0_9, %c0_10] : memref<1x8x1xf32, #tpu.memory_space<vmem>>, vector<1x8x1xf32>
    %14 = vector.shape_cast %13 : vector<1x8x1xf32> to vector<8x1xf32>
    %15 = vector.shape_cast %12 : vector<8x1xf32> to vector<1x8x1xf32>
    tpu.vector_store %arg3[%c0_8, %c0_9, %c0_10], %15 {strides = array<i32>} : memref<1x8x1xf32, #tpu.memory_space<vmem>>, vector<1x8x1xf32>,
    %c0_11 = arith.constant 0 : index
    %c0_12 = arith.constant 0 : index
    %c0_13 = arith.constant 0 : index
    %16 = vector.load %arg2[%c0_11, %c0_12, %c0_13] : memref<1x5x128xf32, #tpu.memory_space<vmem>>, vector<1x1x128xf32>
    %17 = vector.shape_cast %16 : vector<1x1x128xf32> to vector<1x128xf32>
    %c0_14 = arith.constant 0 : index
    %c1_15 = arith.constant 1 : index
    %c0_16 = arith.constant 0 : index
    %18 = vector.load %arg2[%c0_14, %c1_15, %c0_16] : memref<1x5x128xf32, #tpu.memory_space<vmem>>, vector<1x1x128xf32>
    %19 = vector.shape_cast %18 : vector<1x1x128xf32> to vector<1x128xf32>
    %c0_17 = arith.constant 0 : index
    %c2_18 = arith.constant 2 : index
    %c0_19 = arith.constant 0 : index
    %20 = vector.load %arg2[%c0_17, %c2_18, %c0_19] : memref<1x5x128xf32, #tpu.memory_space<vmem>>, vector<1x1x128xf32>
    %21 = vector.shape_cast %20 : vector<1x1x128xf32> to vector<1x128xf32>
    %c0_20 = arith.constant 0 : index
    %c3_21 = arith.constant 3 : index
    %c0_22 = arith.constant 0 : index
    %22 = vector.load %arg2[%c0_20, %c3_21, %c0_22] : memref<1x5x128xf32, #tpu.memory_space<vmem>>, vector<1x1x128xf32>
    %23 = vector.shape_cast %22 : vector<1x1x128xf32> to vector<1x128xf32>
    %c0_23 = arith.constant 0 : index
    %c4 = arith.constant 4 : index
    %c0_24 = arith.constant 0 : index
    %24 = vector.load %arg2[%c0_23, %c4, %c0_24] : memref<1x5x128xf32, #tpu.memory_space<vmem>>, vector<1x1x128xf32>
    %25 = vector.shape_cast %24 : vector<1x1x128xf32> to vector<1x128xf32>
    %26 = vector.broadcast %1 : vector<8x1xf32> to vector<8x128xf32>
    %27 = vector.broadcast %17 : vector<1x128xf32> to vector<8x128xf32>
    %28 = arith.subf %26, %27 : vector<8x128xf32>
    %29 = vector.broadcast %3 : vector<8x1xf32> to vector<8x128xf32>
    %30 = vector.broadcast %19 : vector<1x128xf32> to vector<8x128xf32>
    %31 = arith.subf %29, %30 : vector<8x128xf32>
    %32 = vector.broadcast %21 : vector<1x128xf32> to vector<8x128xf32>
    %33 = arith.mulf %32, %28 : vector<8x128xf32>
    %34 = vector.broadcast %23 : vector<1x128xf32> to vector<8x128xf32>
    %35 = arith.mulf %34, %31 : vector<8x128xf32>
    %36 = arith.addf %33, %35 : vector<8x128xf32>
    %37 = vector.broadcast %21 : vector<1x128xf32> to vector<8x128xf32>
    %38 = arith.mulf %37, %31 : vector<8x128xf32>
    %39 = vector.broadcast %23 : vector<1x128xf32> to vector<8x128xf32>
    %40 = arith.mulf %39, %28 : vector<8x128xf32>
    %41 = arith.subf %38, %40 : vector<8x128xf32>
    %42 = arith.mulf %36, %36 : vector<8x128xf32>
    %43 = arith.mulf %41, %41 : vector<8x128xf32>
    %44 = arith.mulf %42, %42 : vector<8x128xf32>
    %45 = arith.mulf %44, %42 : vector<8x128xf32>
    %46 = arith.mulf %43, %43 : vector<8x128xf32>
    %47 = arith.mulf %46, %43 : vector<8x128xf32>
    %48 = arith.addf %45, %47 : vector<8x128xf32>
    %cst = arith.constant 6.000000e+00 : f32
    %49 = vector.broadcast %cst : f32 to vector<8x128xf32>
    %50 = arith.addf %48, %49 : vector<8x128xf32>
    %51 = tpu.reciprocal %50 {approx = true} : vector<8x128xf32> -> vector<8x128xf32>
    %52 = vector.broadcast %25 : vector<1x128xf32> to vector<8x128xf32>
    %53 = arith.mulf %52, %51 : vector<8x128xf32>
    %54 = arith.mulf %28, %28 : vector<8x128xf32>
    %55 = arith.mulf %31, %31 : vector<8x128xf32>
    %56 = arith.addf %54, %55 : vector<8x128xf32>
    %cst_25 = arith.constant 0.000000e+00 : f32
    %57 = vector.broadcast %cst_25 : f32 to vector<8x128xf32>
    %58 = arith.cmpf ogt, %56, %57 : vector<8x128xf32>
    %59 = math.rsqrt %56 : vector<8x128xf32>
    %60 = arith.mulf %53, %59 : vector<8x128xf32>
    %cst_26 = arith.constant 0.000000e+00 : f32
    %61 = vector.broadcast %cst_26 : f32 to vector<8x128xf32>
    %62 = arith.select %58, %60, %61 : vector<8x128xi1>, vector<8x128xf32>
    %63 = arith.mulf %62, %28 : vector<8x128xf32>
    %cst_27 = arith.constant dense<0.000000e+00> : vector<8xf32>
    %64 = vector.multi_reduction <add>, %63, %cst_27 [1] : vector<8x128xf32> to vector<8xf32>
    %65 = vector.shape_cast %64 : vector<8xf32> to vector<8x1xf32>
    %66 = arith.mulf %62, %31 : vector<8x128xf32>
    %cst_28 = arith.constant dense<0.000000e+00> : vector<8xf32>
    %67 = vector.multi_reduction <add>, %66, %cst_28 [1] : vector<8x128xf32> to vector<8xf32>
    %68 = vector.shape_cast %67 : vector<8xf32> to vector<8x1xf32>
    %69 = arith.mulf %65, %65 : vector<8x1xf32>
    %70 = arith.mulf %68, %68 : vector<8x1xf32>
    %71 = arith.addf %69, %70 : vector<8x1xf32>
    %72 = math.sqrt %71 : vector<8x1xf32>
    %c0_29 = arith.constant 0 : index
    %c0_30 = arith.constant 0 : index
    %c0_31 = arith.constant 0 : index
    %73 = vector.load %arg4[%c0_29, %c0_30, %c0_31] : memref<1x8x1xf32, #tpu.memory_space<vmem>>, vector<1x8x1xf32>
    %74 = vector.shape_cast %73 : vector<1x8x1xf32> to vector<8x1xf32>
    %75 = vector.shape_cast %72 : vector<8x1xf32> to vector<1x8x1xf32>
    tpu.vector_store %arg4[%c0_29, %c0_30, %c0_31], %75 {strides = array<i32>} : memref<1x8x1xf32, #tpu.memory_space<vmem>>, vector<1x8x1xf32>,
    return
  }
  func.func @transform_0(%arg0: i32) -> (i32, i32, i32) {
    %c0_i32 = arith.constant 0 : i32
    %c0_i32_0 = arith.constant 0 : i32
    %c0_i32_1 = arith.constant 0 : i32
    return %arg0, %c0_i32, %c0_i32_0 : i32, i32, i32
  }
  func.func @transform_1(%arg0: i32) -> (i32, i32, i32) {
    %c0_i32 = arith.constant 0 : i32
    %c0_i32_0 = arith.constant 0 : i32
    %c0_i32_1 = arith.constant 0 : i32
    return %arg0, %c0_i32, %c0_i32_0 : i32, i32, i32
  }
  func.func @transform_2(%arg0: i32) -> (i32, i32, i32) {
    %c0_i32 = arith.constant 0 : i32
    %c0_i32_0 = arith.constant 0 : i32
    %c0_i32_1 = arith.constant 0 : i32
    return %arg0, %c0_i32, %c0_i32_0 : i32, i32, i32
  }
  func.func @transform_3(%arg0: i32) -> (i32, i32, i32) {
    %c0_i32 = arith.constant 0 : i32
    %c0_i32_0 = arith.constant 0 : i32
    %c0_i32_1 = arith.constant 0 : i32
    return %arg0, %c0_i32, %c0_i32_0 : i32, i32, i32
  }
}

</mosaic_0001>

<bundles_post_ra>
// kernel: tpu_custom_call.1
= control target key start
LH: loop header
LB: loop body
LE: loop exit
PB: predicated region body
PF: predicated region fallthrough
CT: control target
= control target key end

     0   :  { %s447_s12 = smov 0   ;;  %s476_s0 = inlined_call_operand.vmem [shape: f32[2,8,4], index: 0, kind: input, shape index: {}]   ;;  %s477_s1 = inlined_call_operand.vmem [shape: f32[2,5,128], index: 1, kind: input, shape index: {}]   ;;  %s478_s2 = inlined_call_operand.vmem [shape: f32[2,8,1], index: 2, kind: output, shape index: {0}]   ;;  %s479_s3 = inlined_call_operand.vmem [shape: f32[2,8,1], index: 3, kind: output, shape index: {1}]  }
   0x1 LB: > { %s379_s13 = sadd.s32 4294967295, %s421_s12   ;;  %p383_p0 = scmp.ge.s32.totalorder %s421_s12, 1  ;;  %s421_s12 = sphi %s447_s12, %s14_s12  }
   0x2   : > { %p148_p1 = scmp.lt.s32.totalorder %s421_s12, 3 }
   0x4   : > { %p149_p2 = pnand %p383_p0, %p148_p1 }
   0x5   : > { %p178_p3 = scmp.lt.s32.totalorder (!%p149_p2), %s379_s13, 1  ;;  %v423_v0 = vmov (!%p149_p2), 0   ;;  %s424_s18 = smov (!%p149_p2), 126   ;;  %v425_v2 = vmov (!%p149_p2), 1   ;;  %vm206_vm1 = vcmask (!%p149_p2), 7168  }
   0x6   : > { %152 = sbr.rel (%p149_p2) target bundleno = 346 (0x15a), region = 28  ;;  %407 = vset.pattern.permute.xlu0 (!%p149_p2), %v423_v0  ;;  %s426_s22 = smov (!%p149_p2), 127  }
   0xd   : > { %s481_s13 = smov (!%p178_p3, %s379_s13), 1 }
   0xe   : > { %s455_s14 = sshll.u32 %s481_s13, 3 }
   0xf   : > { %s181_s17 = scalar_lea.vmem %s476_s0, %s455_s14  ;;  %s185_s21 = scalar_lea.vmem %s477_s1, %s455_s14 }
  0x10   : > { %v194_v1 = vld [vmem:[%s181_s17] sm:$0xff]  ;;  %s189_s25 = scalar_lea.vmem %s478_s2, %s455_s14  ;;  %s193_s28 = scalar_lea.vmem %s479_s3, %s455_s14 }
  0x11   : > { %214 = vperm.xlu0 %407, %v194_v1   ;;  %196 = vrot.lane.b32.xlu1 %v194_v1, %s424_s18  ;;  %v388_v4 = vld [vmem:[%s185_s21] ss:$0 sm:$0xff]  ;;  %v389_v5 = vld [vmem:[%s185_s21 + $0x1] ss:$0 sm:$0xff]  ;;  %v390_v7 = vld [vmem:[%s185_s21 + $0x2] ss:$0 sm:$0xff] }
  0x12   : > { %v391_v8 = vld [vmem:[%s185_s21 + $0x3] ss:$0 sm:$0xff]  ;;  %v392_v28 = vld [vmem:[%s185_s21 + $0x4] ss:$0 sm:$0xff] }
  0x15   : > { %408 = vset.pattern.permute.xlu0 %v425_v2 }
  0x16   : > { %223 = vperm.xlu0 %408, %v194_v1  }
  0x83   : > { %v197_v36 = vpop.permute.xlu1 %196 }
  0x84   : > { %v199_v37 = vsub.f32 %v194_v1, %v197_v36 }
  0x86   : > { %v200_v38 = vmul.f32 %v199_v37, %v199_v37 }
  0x90   : > { %v215_v3 = vpop.permute.xlu0 %214 }
  0x91   : > { %v221_v6 = vsub.f32 %v215_v3, %v388_v4 }
  0x93   : > { %v235_v11 = vmul.f32 %v390_v7, %v221_v6  ;;  %v243_v12 = vmul.f32 %v391_v8, %v221_v6  ;;  %v259_v25 = vmul.f32 %v221_v6, %v221_v6 }
  0x95   : > { %v224_v9 = vpop.permute.xlu0 %223 }
  0x96   : > { %v230_v10 = vsub.f32 %v224_v9, %v389_v5 }
  0x98   : > { %v240_v13 = vmul.f32 %v391_v8, %v230_v10  ;;  %v242_v14 = vmul.f32 %v390_v7, %v230_v10  ;;  %v260_v23 = vmul.f32 %v230_v10, %v230_v10 }
  0x9a   : > { %v241_v15 = vadd.f32 %v240_v13, %v235_v11  ;;  %v244_v16 = vsub.f32 %v242_v14, %v243_v12  ;;  %v261_v27 = vadd.f32 %v260_v23, %v259_v25 }
  0x9c   : > { %v245_v17 = vmul.f32 %v241_v15, %v241_v15  ;;  %v246_v18 = vmul.f32 %v244_v16, %v244_v16  ;;  %vm262_vm0 = vcmp.gt.f32.partialorder %v261_v27, 0.0 }
  0x9e   : > { %v247_v19 = vmul.f32 %v245_v17, %v245_v17  ;;  %v249_v20 = vmul.f32 %v246_v18, %v246_v18 }
  0xa0   : > { %v248_v21 = vmul.f32 %v247_v19, %v245_v17  ;;  %v250_v22 = vmul.f32 %v249_v20, %v246_v18 }
  0xa2   : > { %v251_v24 = vadd.f32 %v250_v22, %v248_v21 }
  0xa4   : > { %v252_v26 = vadd.f32 6.0, %v251_v24 }
  0xa6   : > { %409 = vrcp.f32 %v252_v26 }
  0xa7   : > { %411 = vrsqrt.f32 %v261_v27 }
  0xb0   : > { %v410_v29 = vpop.eup %409 }
  0xb1   : > { %v258_v30 = vmul.f32 %v410_v29, %v392_v28  ;;  %v412_v31 = vpop.eup %411 }
  0xb3   : > { %v264_v32 = vmul.f32 %v412_v31, %v258_v30 }
  0xb5   : > { %v265_v33 = vsel %vm262_vm0, %v264_v32, 0.0 }
  0xb6   : > { %v269_v34 = vmul.f32 %v265_v33, %v230_v10  ;;  %v266_v35 = vmul.f32 %v265_v33, %v221_v6 }
  0xb8   : > { %270 = vadd.xlane.f32.xlu0 %v269_v34  ;;  %267 = vadd.xlane.f32.xlu1 %v266_v35 }
  0xc9   : > { %202 = vrot.lane.b32.xlu1 %v200_v38, %s426_s22 }
 0x145   : > { %v271_v39 = vpop.xlane.xlu0 %270  ;;  %v268_v40 = vpop.xlane.xlu1 %267 }
 0x146   : > { %v273_v41 = vmul.f32 %v271_v39, %v271_v39  ;;  %v272_v42 = vmul.f32 %v268_v40, %v268_v40 }
 0x148   : > { %v274_v43 = vadd.f32 %v273_v41, %v272_v42 }
 0x149   : > { %v203_v44 = vpop.permute.xlu1 %202 }
 0x14a   : > { %413 = vrsqrt.f32 %v274_v43  ;;  %v205_v45 = vadd.f32 %v203_v44, %v200_v38  ;;  %vm277_vm2 = vcmp.eq.f32.partialorder %v274_v43, inf  ;;  %v280_v48 = vand.u32 2147483648, %v274_v43 }
 0x14b   : > { %vm279_vm3 = vcmp.eq.f32.partialorder %v274_v43, 0.0 }
 0x14c   : > { %207 = vst.msk [vmem:[%s189_s25] sm:$0xff] %vm206_vm1, %v205_v45 }
 0x154   : > { %v414_v46 = vpop.eup %413 }
 0x155   : > { %v276_v47 = vmul.f32 %v414_v46, %v274_v43 }
 0x157   : > { %v278_v49 = vsel %vm277_vm2, %v274_v43, %v276_v47 }
 0x158   : > { %v281_v50 = vsel %vm279_vm3, %v280_v48, %v278_v49 }
 0x159   : > { %282 = vst.msk [vmem:[%s193_s28] sm:$0xff] %vm206_vm1, %v281_v50 }
 0x15a PF: > { %s14_s12 = sadd.s32 1, %s421_s12  }
 0x15b   : > { %p11_p4 = scmp.ge.s32.totalorder %s14_s12, 4  }
 0x15d   :  { %13 = sbr.rel (!%p11_p4) target bundleno = 1 (0x1), region = 73 }

</bundles_post_ra>
